<compile_context>
chip_gen: v7x
topology: tpu7x:2x2x1
jax: 0.10.0
libtpu: 0.0.40
codegen_flags: <defaults>
</compile_context>

<pallas_src>
import functools

import jax
import jax.numpy as jnp
from jax.experimental import pallas as pl
from jax.experimental.pallas import tpu as pltpu


_MiB = 1024 * 1024
# Per-step fused working set above which we fall back to the tiled two-pass
# path.  Chosen so (working * 1.25 + slack) stays well under v7x's 64 MiB/TC.
_DEFAULT_MAX_FUSED_VMEM = 44 * _MiB


def _vmem_limit(working_set_bytes):
    # working set + 25% layout/padding slack + 2 MiB for small tiles/scratch,
    # floored at 16 MiB, capped below the smallest chip's physical VMEM.
    return int(min(60 * _MiB, max(16 * _MiB, 1.25 * working_set_bytes + 2 * _MiB)))


# ---------------------------------------------------------------------------
# Fused single-pass kernel (whole per-image slab resident in VMEM).
# ---------------------------------------------------------------------------

def _se_fused_kernel(x_ref, w1_ref, b1_ref, w2_ref, b2_ref, o_ref, *,
                     channels_on_lanes):
    """Squeeze + excite + scale on a VMEM-resident slab.

    channels_on_lanes=False: x block (1, C, HW);  w1 (C, Cr), b1 (1, Cr),
                             w2 (C, Cr), b2 (C, 1)        [spatial on lanes]
    channels_on_lanes=True : x block (1, HW, C);  w1 (Cr, C), b1 (Cr, 1),
                             w2 (Cr, C), b2 (1, C)        [channels on lanes]
    """
    x = x_ref[0]
    xf = x.astype(jnp.float32)      # pooling / gate math always in f32
    if channels_on_lanes:
        pooled = jnp.mean(xf, axis=0, keepdims=True)                  # (1, C)
        # squeeze matvec on the VPU: (Cr, C) * (1, C) --lane-reduce--> (Cr, 1)
        s1 = jnp.sum(w1_ref[...] * pooled, axis=1, keepdims=True) + b1_ref[...]
        s1 = jnp.maximum(s1, 0.0)                                     # (Cr, 1)
        # excite matvec: (Cr, C) * (Cr, 1) --sublane-reduce--> (1, C)
        s2 = jnp.sum(w2_ref[...] * s1, axis=0, keepdims=True) + b2_ref[...]
        gate = jax.nn.sigmoid(s2)                                     # (1, C)
    else:
        pooled = jnp.mean(xf, axis=1, keepdims=True)                  # (C, 1)
        # squeeze matvec: (C, Cr) * (C, 1) --sublane-reduce--> (1, Cr)
        s1 = jnp.sum(w1_ref[...] * pooled, axis=0, keepdims=True) + b1_ref[...]
        s1 = jnp.maximum(s1, 0.0)                                     # (1, Cr)
        # excite matvec: (C, Cr) * (1, Cr) --lane-reduce--> (C, 1)
        s2 = jnp.sum(w2_ref[...] * s1, axis=1, keepdims=True) + b2_ref[...]
        gate = jax.nn.sigmoid(s2)                                     # (C, 1)
    o_ref[0] = x * gate.astype(x.dtype)


def _se_fused_call(x3, w1, b1, w2, b2, *, channels_on_lanes, vmem_bytes,
                   donate_input):
    N = x3.shape[0]
    Cr = w1.shape[0]
    if channels_on_lanes:
        _, HW, C = x3.shape
        params = (w1, b1.reshape(Cr, 1), w2.T, b2.reshape(1, C))
        x_block = (1, HW, C)
    else:
        _, C, HW = x3.shape
        params = (w1.T, b1.reshape(1, Cr), w2, b2.reshape(C, 1))
        x_block = (1, C, HW)

    in_specs = [pl.BlockSpec(x_block, lambda n: (n, 0, 0))]
    in_specs += [pl.BlockSpec(p.shape, lambda n: (0, 0)) for p in params]

    kernel = functools.partial(_se_fused_kernel,
                               channels_on_lanes=channels_on_lanes)
    return pl.pallas_call(
        kernel,
        out_shape=jax.ShapeDtypeStruct(x3.shape, x3.dtype),
        grid_spec=pltpu.PrefetchScalarGridSpec(
            num_scalar_prefetch=0,
            grid=(N,),
            in_specs=in_specs,
            out_specs=pl.BlockSpec(x_block, lambda n: (n, 0, 0)),
        ),
        compiler_params=pltpu.CompilerParams(
            dimension_semantics=("parallel",),
            vmem_limit_bytes=vmem_bytes),
        input_output_aliases=({0: 0} if donate_input else {}),
    )(x3, *params)


# ---------------------------------------------------------------------------
# Two-pass tiled fallback (large activations that do not fit VMEM).
# ---------------------------------------------------------------------------

def _se_pool_kernel(x_ref, sum_ref, *, spatial_axis, spatial_size):
    """Accumulate per-channel sums of x over spatial tiles.

    Grid is (N, num_tiles); the tile axis is last and "arbitrary", so the
    (1, C, 1) / (1, 1, C) sum block stays resident across tiles (accumulator).
    """
    t = pl.program_id(1)

    @pl.when(t == 0)
    def _():
        sum_ref[...] = jnp.zeros_like(sum_ref)

    xf = x_ref[0].astype(jnp.float32)
    tile = xf.shape[spatial_axis]
    if spatial_size % tile != 0:
        # Ragged last tile: zero the out-of-bounds (padded) elements.
        pos = jax.lax.broadcasted_iota(jnp.int32, xf.shape, spatial_axis)
        xf = jnp.where(t * tile + pos < spatial_size, xf, 0.0)
    sum_ref[0] = sum_ref[0] + jnp.sum(xf, axis=spatial_axis, keepdims=True)


def _se_scale_kernel(x_ref, gate_ref, o_ref):
    x = x_ref[0]
    o_ref[0] = x * gate_ref[0].astype(x.dtype)


def _se_two_pass_call(x3, w1, b1, w2, b2, *, channels_on_lanes, hw_tile,
                      donate_input):
    N = x3.shape[0]
    itemsize = jnp.dtype(x3.dtype).itemsize
    if channels_on_lanes:
        _, HW, C = x3.shape
        spatial_axis = 0
        x_index = lambda n, t: (n, t, 0)
    else:
        _, C, HW = x3.shape
        spatial_axis = 1
        x_index = lambda n, t: (n, 0, t)

    if hw_tile is None:
        # ~4 MiB of activation per tile buffer keeps the DMA pipeline near the
        # HBM roofline while fitting comfortably in VMEM on all generations.
        hw_tile = max(1, (4 * _MiB) // (C * itemsize))
        hw_tile = max(128, (hw_tile // 128) * 128)
    hw_tile = min(hw_tile, HW)                 # must be a multiple of 128 or HW
    num_tiles = pl.cdiv(HW, hw_tile)
    tile_bytes = C * hw_tile * itemsize

    if channels_on_lanes:
        x_block = (1, hw_tile, C)
        g_shape, g_block = (N, 1, C), (1, 1, C)
    else:
        x_block = (1, C, hw_tile)
        g_shape, g_block = (N, C, 1), (1, C, 1)

    # ---- pass 1: per-channel spatial sums (accumulator over the tile axis).
    pool_kernel = functools.partial(
        _se_pool_kernel, spatial_axis=spatial_axis, spatial_size=HW)
    sums = pl.pallas_call(
        pool_kernel,
        out_shape=jax.ShapeDtypeStruct(g_shape, jnp.float32),
        grid_spec=pltpu.PrefetchScalarGridSpec(
            num_scalar_prefetch=0,
            grid=(N, num_tiles),
            in_specs=[pl.BlockSpec(x_block, x_index)],
            out_specs=pl.BlockSpec(g_block, lambda n, t: (n, 0, 0)),
        ),
        compiler_params=pltpu.CompilerParams(
            dimension_semantics=("parallel", "arbitrary"),
            vmem_limit_bytes=_vmem_limit(2 * tile_bytes)),
    )(x3)

    # ---- tiny gate matvecs in plain XLA (a few kFLOPs per image).
    hp = jax.lax.Precision.HIGHEST
    pooled = sums.reshape(N, C) / jnp.float32(HW)                     # (N, C)
    s1 = jnp.maximum(jnp.matmul(pooled, w1.T, precision=hp) + b1[None, :], 0.0)
    gate = jax.nn.sigmoid(jnp.matmul(s1, w2.T, precision=hp) + b2[None, :])
    gate = gate.reshape(g_shape).astype(jnp.float32)

    # ---- pass 2: rescale; both grid axes parallel (feeds both v7x cores).
    return pl.pallas_call(
        _se_scale_kernel,
        out_shape=jax.ShapeDtypeStruct(x3.shape, x3.dtype),
        grid_spec=pltpu.PrefetchScalarGridSpec(
            num_scalar_prefetch=0,
            grid=(N, num_tiles),
            in_specs=[pl.BlockSpec(x_block, x_index),
                      pl.BlockSpec(g_block, lambda n, t: (n, 0, 0))],
            out_specs=pl.BlockSpec(x_block, x_index),
        ),
        compiler_params=pltpu.CompilerParams(
            dimension_semantics=("parallel", "parallel"),
            vmem_limit_bytes=_vmem_limit(4 * tile_bytes)),
        input_output_aliases=({0: 0} if donate_input else {}),
    )(x3, gate)


# ---------------------------------------------------------------------------
# Public wrappers.
# ---------------------------------------------------------------------------

def _prep_params(w1, b1, w2, b2):
    # Gate math is always f32 (exact on all generations, incl. v5e).
    return (w1.astype(jnp.float32), b1.astype(jnp.float32),
            w2.astype(jnp.float32), b2.astype(jnp.float32))


def _working_set_bytes(C, HW, itemsize):
    # input + output double-buffered, plus one f32 slab of headroom for casts.
    return 4 * C * HW * itemsize + 4 * C * HW


def se_forward(x_nchw, w1, b1, w2, b2, *,
               max_fused_vmem_bytes=_DEFAULT_MAX_FUSED_VMEM,
               hw_tile=None, donate_input=False):
    """SE forward for NCHW input (matches the PyTorch module).

    x_nchw: (N, C, H, W); w1: (C//r, C); b1: (C//r,); w2: (C, C//r); b2: (C,).
    Output dtype == input dtype (bf16 in -> bf16 out; gate math in f32).
    """
    N, C, H, W = x_nchw.shape
    HW = H * W
    w1, b1, w2, b2 = _prep_params(w1, b1, w2, b2)
    x3 = x_nchw.reshape(N, C, HW)                       # spatial on lanes
    working = _working_set_bytes(C, HW, jnp.dtype(x3.dtype).itemsize)
    if working <= max_fused_vmem_bytes:
        out = _se_fused_call(x3, w1, b1, w2, b2, channels_on_lanes=False,
                             vmem_bytes=_vmem_limit(working),
                             donate_input=donate_input)
    else:
        out = _se_two_pass_call(x3, w1, b1, w2, b2, channels_on_lanes=False,
                                hw_tile=hw_tile, donate_input=donate_input)
    return out.reshape(N, C, H, W)


def se_forward_nhwc(x_nhwc, w1, b1, w2, b2, *,
                    max_fused_vmem_bytes=_DEFAULT_MAX_FUSED_VMEM,
                    hw_tile=None, donate_input=False):
    """SE forward for NHWC input: channels ride the lane axis, which is the
    lane-dense layout for late stages (HW < 128 <= C), with no HBM transpose."""
    N, H, W, C = x_nhwc.shape
    HW = H * W
    w1, b1, w2, b2 = _prep_params(w1, b1, w2, b2)
    x3 = x_nhwc.reshape(N, HW, C)                       # channels on lanes
    working = _working_set_bytes(C, HW, jnp.dtype(x3.dtype).itemsize)
    if working <= max_fused_vmem_bytes:
        out = _se_fused_call(x3, w1, b1, w2, b2, channels_on_lanes=True,
                             vmem_bytes=_vmem_limit(working),
                             donate_input=donate_input)
    else:
        out = _se_two_pass_call(x3, w1, b1, w2, b2, channels_on_lanes=True,
                                hw_tile=hw_tile, donate_input=donate_input)
    return out.reshape(N, H, W, C)


# ---------------------------------------------------------------------------
# Pure-JAX reference and self-test.
# ---------------------------------------------------------------------------

def se_reference(x_nchw, w1, b1, w2, b2):
    hp = jax.lax.Precision.HIGHEST
    xf = x_nchw.astype(jnp.float32)
    pooled = jnp.mean(xf, axis=(2, 3))                                 # (N, C)
    s1 = jnp.maximum(jnp.matmul(pooled, w1.T, precision=hp) + b1[None, :], 0.0)
    gate = jax.nn.sigmoid(jnp.matmul(s1, w2.T, precision=hp) + b2[None, :])
    return xf * gate[:, :, None, None]


if __name__ == "__main__":
    key = jax.random.PRNGKey(0)

    def make(k, N, C, H, W, ratio, dtype):
        Cr = max(1, C // ratio)
        kx, k1, k2, k3, k4 = jax.random.split(k, 5)
        x = jax.random.normal(kx, (N, C, H, W), dtype=jnp.float32).astype(dtype)
        w1 = jax.random.normal(k1, (Cr, C), dtype=jnp.float32) * 0.1
        b1 = jax.random.normal(k2, (Cr,), dtype=jnp.float32) * 0.1
        w2 = jax.random.normal(k3, (C, Cr), dtype=jnp.float32) * 0.1
        b2 = jax.random.normal(k4, (C,), dtype=jnp.float32) * 0.1
        return x, w1, b1, w2, b2

    keys = jax.random.split(key, 3)

    # 1) fused path, f32, NCHW (spatial on lanes).
    x, w1, b1, w2, b2 = make(keys[0], 2, 8, 16, 16, ratio=2, dtype=jnp.float32)
    out = jax.block_until_ready(se_forward(x, w1, b1, w2, b2))
    ref = se_reference(x, w1, b1, w2, b2)
    assert out.shape == x.shape and out.dtype == x.dtype
    assert jnp.allclose(out, ref, atol=1e-5, rtol=1e-5), "fused f32 NCHW mismatch"

    # 2) fused path, bf16 I/O (gate math stays f32 inside the kernel).
    xb = x.astype(jnp.bfloat16)
    outb = jax.block_until_ready(se_forward(xb, w1, b1, w2, b2))
    refb = se_reference(xb, w1, b1, w2, b2)
    assert outb.dtype == jnp.bfloat16
    assert jnp.allclose(outb.astype(jnp.float32), refb, atol=3e-2, rtol=3e-2), \
        "fused bf16 NCHW mismatch"

    # 3) fused path, NHWC entry (channels lane-dense: HW=16 < 128 <= C=256).
    xc, w1c, b1c, w2c, b2c = make(keys[1], 2, 256, 4, 4, ratio=4,
                                  dtype=jnp.float32)
    x_nhwc = jnp.transpose(xc, (0, 2, 3, 1))
    outc = jax.block_until_ready(se_forward_nhwc(x_nhwc, w1c, b1c, w2c, b2c))
    refc = jnp.transpose(se_reference(xc, w1c, b1c, w2c, b2c), (0, 2, 3, 1))
    assert jnp.allclose(outc, refc, atol=1e-5, rtol=1e-5), "fused NHWC mismatch"

    # 4) two-pass tiled fallback (forced), ragged HW tiling: 400 = 3*128 + 16.
    xt, w1t, b1t, w2t, b2t = make(keys[2], 2, 8, 20, 20, ratio=2,
                                  dtype=jnp.float32)
    outt = jax.block_until_ready(
        se_forward(xt, w1t, b1t, w2t, b2t,
                   max_fused_vmem_bytes=1, hw_tile=128))
    reft = se_reference(xt, w1t, b1t, w2t, b2t)
    assert jnp.allclose(outt, reft, atol=1e-5, rtol=1e-5), "two-pass mismatch"

    print("KERNEL_OK")
</pallas_src>

<mosaic_0001>
module attributes {stable_mosaic.version = 11 : i64} {
  func.func @_se_fused_kernel(%arg0: i32, %arg1: memref<1x8x256xf32, #tpu.memory_space<vmem>>, %arg2: memref<8x4xf32, #tpu.memory_space<vmem>>, %arg3: memref<1x4xf32, #tpu.memory_space<vmem>>, %arg4: memref<8x4xf32, #tpu.memory_space<vmem>>, %arg5: memref<8x1xf32, #tpu.memory_space<vmem>>, %arg6: memref<1x8x256xf32, #tpu.memory_space<vmem>>) attributes {dimension_semantics = [#tpu.dimension_semantics<parallel>], iteration_bounds = array<i64: 2>, scalar_prefetch = 0 : i64, scratch_operands = 0 : i64, tpu.core_type = #tpu.core_type<tc>, window_params = [{transform_indices = @transform_0, window_bounds = array<i64: 1, 8, 256>}, {pipeline_mode = #tpu.pipeline_mode<synchronous>, transform_indices = @transform_1, window_bounds = array<i64: 8, 4>}, {pipeline_mode = #tpu.pipeline_mode<synchronous>, transform_indices = @transform_2, window_bounds = array<i64: 1, 4>}, {pipeline_mode = #tpu.pipeline_mode<synchronous>, transform_indices = @transform_3, window_bounds = array<i64: 8, 4>}, {pipeline_mode = #tpu.pipeline_mode<synchronous>, transform_indices = @transform_4, window_bounds = array<i64: 8, 1>}, {transform_indices = @transform_5, window_bounds = array<i64: 1, 8, 256>}]} {
    %c0 = arith.constant 0 : index
    %c0_0 = arith.constant 0 : index
    %c0_1 = arith.constant 0 : index
    %0 = vector.load %arg1[%c0, %c0_0, %c0_1] : memref<1x8x256xf32, #tpu.memory_space<vmem>>, vector<1x8x256xf32>
    %1 = vector.shape_cast %0 : vector<1x8x256xf32> to vector<8x256xf32>
    %cst = arith.constant dense<0.000000e+00> : vector<8xf32>
    %2 = vector.multi_reduction <add>, %1, %cst [1] : vector<8x256xf32> to vector<8xf32>
    %3 = vector.shape_cast %2 : vector<8xf32> to vector<8x1xf32>
    %cst_2 = arith.constant 2.560000e+02 : f32
    %4 = vector.broadcast %cst_2 : f32 to vector<8x1xf32>
    %5 = arith.divf %3, %4 : vector<8x1xf32>
    %c0_3 = arith.constant 0 : index
    %c0_4 = arith.constant 0 : index
    %6 = vector.load %arg2[%c0_3, %c0_4] : memref<8x4xf32, #tpu.memory_space<vmem>>, vector<8x4xf32>
    %7 = vector.broadcast %5 : vector<8x1xf32> to vector<8x4xf32>
    %8 = arith.mulf %6, %7 : vector<8x4xf32>
    %cst_5 = arith.constant dense<0.000000e+00> : vector<4xf32>
    %9 = vector.multi_reduction <add>, %8, %cst_5 [0] : vector<8x4xf32> to vector<4xf32>
    %10 = vector.shape_cast %9 : vector<4xf32> to vector<1x4xf32>
    %c0_6 = arith.constant 0 : index
    %c0_7 = arith.constant 0 : index
    %11 = vector.load %arg3[%c0_6, %c0_7] : memref<1x4xf32, #tpu.memory_space<vmem>>, vector<1x4xf32>
    %12 = arith.addf %10, %11 : vector<1x4xf32>
    %cst_8 = arith.constant 0.000000e+00 : f32
    %13 = vector.broadcast %cst_8 : f32 to vector<1x4xf32>
    %14 = arith.maximumf %12, %13 : vector<1x4xf32>
    %c0_9 = arith.constant 0 : index
    %c0_10 = arith.constant 0 : index
    %15 = vector.load %arg4[%c0_9, %c0_10] : memref<8x4xf32, #tpu.memory_space<vmem>>, vector<8x4xf32>
    %16 = vector.broadcast %14 : vector<1x4xf32> to vector<8x4xf32>
    %17 = arith.mulf %15, %16 : vector<8x4xf32>
    %cst_11 = arith.constant dense<0.000000e+00> : vector<8xf32>
    %18 = vector.multi_reduction <add>, %17, %cst_11 [1] : vector<8x4xf32> to vector<8xf32>
    %19 = vector.shape_cast %18 : vector<8xf32> to vector<8x1xf32>
    %c0_12 = arith.constant 0 : index
    %c0_13 = arith.constant 0 : index
    %20 = vector.load %arg5[%c0_12, %c0_13] : memref<8x1xf32, #tpu.memory_space<vmem>>, vector<8x1xf32>
    %21 = arith.addf %19, %20 : vector<8x1xf32>
    %22 = arith.negf %21 : vector<8x1xf32>
    %23 = math.exp %22 : vector<8x1xf32>
    %cst_14 = arith.constant 1.000000e+00 : f32
    %24 = vector.broadcast %cst_14 : f32 to vector<8x1xf32>
    %25 = arith.addf %24, %23 : vector<8x1xf32>
    %26 = arith.divf %24, %25 : vector<8x1xf32>
    %27 = vector.broadcast %26 : vector<8x1xf32> to vector<8x256xf32>
    %28 = arith.mulf %1, %27 : vector<8x256xf32>
    %c0_15 = arith.constant 0 : index
    %c0_16 = arith.constant 0 : index
    %c0_17 = arith.constant 0 : index
    %29 = vector.load %arg6[%c0_15, %c0_16, %c0_17] : memref<1x8x256xf32, #tpu.memory_space<vmem>>, vector<1x8x256xf32>
    %30 = vector.shape_cast %29 : vector<1x8x256xf32> to vector<8x256xf32>
    %31 = vector.shape_cast %28 : vector<8x256xf32> to vector<1x8x256xf32>
    tpu.vector_store %arg6[%c0_15, %c0_16, %c0_17], %31 {strides = array<i32>} : memref<1x8x256xf32, #tpu.memory_space<vmem>>, vector<1x8x256xf32>,
    return
  }
  func.func @transform_0(%arg0: i32) -> (i32, i32, i32) {
    %c0_i32 = arith.constant 0 : i32
    %c0_i32_0 = arith.constant 0 : i32
    %c0_i32_1 = arith.constant 0 : i32
    return %arg0, %c0_i32, %c0_i32_0 : i32, i32, i32
  }
  func.func @transform_1(%arg0: i32) -> (i32, i32) {
    %c0_i32 = arith.constant 0 : i32
    %c0_i32_0 = arith.constant 0 : i32
    %c0_i32_1 = arith.constant 0 : i32
    return %c0_i32, %c0_i32_0 : i32, i32
  }
  func.func @transform_2(%arg0: i32) -> (i32, i32) {
    %c0_i32 = arith.constant 0 : i32
    %c0_i32_0 = arith.constant 0 : i32
    %c0_i32_1 = arith.constant 0 : i32
    return %c0_i32, %c0_i32_0 : i32, i32
  }
  func.func @transform_3(%arg0: i32) -> (i32, i32) {
    %c0_i32 = arith.constant 0 : i32
    %c0_i32_0 = arith.constant 0 : i32
    %c0_i32_1 = arith.constant 0 : i32
    return %c0_i32, %c0_i32_0 : i32, i32
  }
  func.func @transform_4(%arg0: i32) -> (i32, i32) {
    %c0_i32 = arith.constant 0 : i32
    %c0_i32_0 = arith.constant 0 : i32
    %c0_i32_1 = arith.constant 0 : i32
    return %c0_i32, %c0_i32_0 : i32, i32
  }
  func.func @transform_5(%arg0: i32) -> (i32, i32, i32) {
    %c0_i32 = arith.constant 0 : i32
    %c0_i32_0 = arith.constant 0 : i32
    %c0_i32_1 = arith.constant 0 : i32
    return %arg0, %c0_i32, %c0_i32_0 : i32, i32, i32
  }
}

</mosaic_0001>

<bundles_post_ra>
// kernel: tpu_custom_call.1
= control target key start
LH: loop header
LB: loop body
LE: loop exit
PB: predicated region body
PF: predicated region fallthrough
CT: control target
= control target key end

     0   :  { %10 = vsyncpa [#allocation3], 0  ;;  %s614_s0 = inlined_call_operand.vmem [shape: f32[2,8,256], index: 0, kind: input, shape index: {}]   ;;  %s615_s1 = inlined_call_operand.vmem [shape: f32[8,4], index: 1, kind: input, shape index: {}]   ;;  %s616_s2 = inlined_call_operand.vmem [shape: f32[1,4], index: 2, kind: input, shape index: {}]   ;;  %s617_s3 = inlined_call_operand.vmem [shape: f32[8,4], index: 3, kind: input, shape index: {}]   ;;  %s618_s4 = inlined_call_operand.vmem [shape: f32[8,1], index: 4, kind: input, shape index: {}]   ;;  %s619_s5 = inlined_call_operand.hbm [shape: f32[2,8,256], index: 5, kind: output, shape index: {}]  }
   0x1   :  { %12 = vsyncpa [#allocation3 + $0x1], 0  ;;  %s500_s18 = smov 0   ;;  %s502_s19 = smov 0  }
   0x2   :  { %s504_s20 = smov 0   ;;  %s506_s21 = smov 0  }
   0x3 LB: > { %s521_s22 = sadd.s32 4294967295, %s466_s21   ;;  %s343_s23 = sadd.s32 4294967294, %s466_s21   ;;  %s466_s21 = sphi %s506_s21, %s625_s21   ;;  %s462_s20 = sphi %s504_s20, %s624_s20   ;;  %s458_s19 = sphi %s502_s19, %s623_s19   ;;  %s454_s18 = sphi %s500_s18, %s622_s18  }
   0x4   : > { %s525_s24 = sadd.s32 1, %s466_s21   ;;  %s135_s25 = sadd.s32 1, %s462_s20 }
   0x5   : > { %s132_s26 = ssub.s32 %s466_s21, %s525_s24  ;;  %p145_p0 = scmp.ne.s32.totalorder %s462_s20, %s458_s19 }
   0x6   : > { %p133_p1 = scmp.eq.s32.totalorder %s132_s26, 0  ;;  %p146_p2 = scmp.eq.s32.totalorder %s521_s22, 1 }
   0x7   : > { %p151_p3 = scmp.ne.s32.totalorder %s458_s19, %s454_s18  ;;  %p152_p4 = scmp.eq.s32.totalorder %s343_s23, 1 }
   0x8   : > { %s536_s27 = scalar_select %p133_p1, %s462_s20, %s135_s25  }
   0x9   : > { %p538_p5 = por %p146_p2, %p145_p0  ;;  %p542_p6 = por %p152_p4, %p151_p3 }
   0xa   : > { %p346_p7 = scmp.ge.s32.totalorder %s466_s21, 1  ;;  %p190_p8 = scmp.lt.s32.totalorder %s466_s21, 3 }
   0xc   : > { %p191_p9 = pnand %p346_p7, %p190_p8 }
   0xd   : > { %p218_p10 = scmp.lt.s32.totalorder (!%p191_p9), %s521_s22, 1  ;;  %v230_v3 = vld [vmem:[%s615_s1] sm:$0xff] (!%p191_p9)  ;;  %vm232_vm0 = vcmask (!%p191_p9), 31744   ;;  %v244_v11 = vlaneseq (!%p191_p9)  ;;  %v468_v24 = vmov (!%p191_p9), 0   ;;  %s215_s23 = sand.u32 (!%p191_p9), 1, %s458_s19  }
   0xe   : > { %194 = sbr.rel (%p191_p9) target bundleno = 510 (0x1fe), region = 40  ;;  %v240_v15 = vld [vmem:[%s616_s2] sm:$0x1] (!%p191_p9)  ;;  %398 = vset.pattern.permute.xlu1 (!%p191_p9), %v468_v24  ;;  %399 = vset.pattern.permute.xlu0 (!%p191_p9), %v468_v24  ;;  %s347_s25 = sshll.u32 (!%p191_p9), %s215_s23, 4 }
   0xf   : > { %v245_v14 = vshrl.u32 (!%p191_p9), %v244_v11, 7  ;;  %v243_v20 = vld [vmem:[%s617_s3] sm:$0xff] (!%p191_p9)  ;;  %s357_s26 = sshll.u32 (!%p191_p9), %s521_s22, 8  ;;  %s270_s10 = scalar_lea.sflag (!%p191_p9), [#allocation3], %s215_s23 }
  0x10   : > { %v252_v25 = vld [vmem:[%s618_s4] sm:$0xff] (!%p191_p9) }
  0x11   : > { %v246_v18 = vsub.s32 (!%p191_p9), 0, %v245_v14 }
  0x15   : > { %s219_s30 = scalar_select %p218_p10, %s521_s22, 1 }
  0x16   : > { %s469_s22 = smov [#allocation2]  }
  0x17   : > { %s356_s6 = sshll.u32 %s219_s30, 4  ;;  %s217_s30 = scalar_lea.vmem [#allocation2], %s347_s25 }
  0x18   : > { %s222_s9 = scalar_lea.vmem %s614_s0, %s356_s6  ;;  %s284_s6 = sshll.u32 %s217_s30, 4  ;;  %s574_s6 = int_to_ptr.vmem [resolvable:$true] %s284_s6 }
  0x19   : > { %v223_v0 = vld [vmem:[%s222_s9] sm:$0xff]  ;;  %v224_v1 = vld [vmem:[%s222_s9 + $0x8] sm:$0xff]  ;;  %s572_s9 = scalar_lea.hbm %s619_s5, %s357_s26  ;;  %s404_s11 = scalar_lea.vmem %s574_s6, 256 }
  0x1a   : > { %v225_v2 = vadd.f32 %v224_v1, %v223_v0  ;;  %p405_p11 = scmp.ne.s32.totalorder %s574_s6, %s404_s11  ;;  %s408_s12 = sshll.u32 %s469_s22, 4  ;;  %s409_s12 = int_to_ptr.vmem [resolvable:$false] %s408_s12 }
  0x1b   : > { %s410_s13 = scalar_lea.vmem %s409_s12, 512  ;;  %p411_p0 = scmp.lt.s32.totalorder %s574_s6, %s409_s12 }
  0x1c   : > { %226 = vadd.xlane.f32.xlu0 %v225_v2  ;;  %p406_p12 = pnand %p405_p11, %p538_p5  ;;  %p412_p1 = scmp.lt.s32.totalorder %s410_s13, %s404_s11 }
  0x1e   : > { %p407_p13 = pneg %p406_p12  ;;  %p413_p2 = por %p412_p1, %p411_p0 }
  0x20   : > { %p414_p3 = pnand %p413_p2, %p407_p13 }
  0xa9   : > { %v227_v4 = vpop.xlane.xlu0 %226 }
  0xaa   : > { %v229_v5 = vmul.f32 0.00390625, %v227_v4 }
  0xac   : > { %v231_v6 = vmul.f32 %v230_v3, %v229_v5 }
  0xae   : > { %v233_v7 = vsel %vm232_vm0, %v231_v6, 0.0 }
  0xaf   : > { %v234_v8 = vrot.slane %v233_v7, 4 }
  0xb1   : > { %v235_v9 = vadd.f32 %v234_v8, %v233_v7 }
  0xb3   : > { %v236_v10 = vrot.slane %v235_v9, 2 }
  0xb5   : > { %v237_v12 = vadd.f32 %v236_v10, %v235_v9 }
  0xb7   : > { %v238_v13 = vrot.slane %v237_v12, 1 }
  0xb9   : > { %v239_v16 = vadd.f32 %v238_v13, %v237_v12 }
  0xbb   : > { %v241_v17 = vadd.f32 %v240_v15, %v239_v16 }
  0xbd   : > { %v242_v19 = vmax.f32 %v241_v17, 0.0 }
  0xbf   : > { %v247_v21 = vrot.slane %v242_v19, %v246_v18 }
  0xc1   : > { %v248_v22 = vmul.f32 %v247_v21, %v243_v20 }
  0xc3   : > { %v249_v23 = vsel %vm232_vm0, %v248_v22, 0.0 }
  0xc4   : > { %250 = vadd.xlane.f32.xlu0 %v249_v23 }
 0x151   : > { %v251_v26 = vpop.xlane.xlu0 %250 }
 0x152   : > { %v253_v27 = vadd.f32 %v252_v25, %v251_v26 }
 0x154   : > { %v350_v28 = vmul.f32 -1.442695, %v253_v27 }
 0x156   : > { %400 = vpow2.f32 %v350_v28 }
 0x160   : > { %v401_v29 = vpop.eup %400 }
 0x161   : > { %v257_v30 = vadd.f32 1.0, %v401_v29 }
 0x163   : > { %402 = vrcp.f32 %v257_v30 }
 0x16d   : > { %v403_v31 = vpop.eup %402 }
 0x16e   : > { %262 = vperm.xlu1 %398, %v403_v31  }
 0x1ed   : > { %v263_v32 = vpop.permute.xlu1 %262 }
 0x1ee   : > { %v265_v33 = vmul.f32 %v263_v32, %v223_v0  ;;  %v266_v34 = vmul.f32 %v263_v32, %v224_v1 }
 0x1f0   : > { %267 = vst [vmem:[%s217_s30] sm:$0xff] %v265_v33  ;;  %268 = vst [vmem:[%s217_s30 + $0x8] sm:$0xff] %v266_v34 }
 0x1f1   : > { %417 = shalt.err (!%p414_p3)
}
 0x1f2   : > { %s418_s14 = scalar_lea.hbm %s572_s9, 256  ;;  %s422_s17 = scalar_lea.hbm %s619_s5, 512 }
 0x1f3   : > { %p419_p4 = scmp.ne.s32.totalorder %s572_s9, %s418_s14  ;;  %p423_p9 = scmp.lt.u32.totalorder %s572_s9, %s619_s5 }
 0x1f4   : > { %p424_p10 = scmp.lt.u32.totalorder %s422_s17, %s418_s14  ;;  %p426_p12 = scmp.lt.u32.totalorder %s418_s14, %s572_s9 }
 0x1f5   : > { %p420_p7 = pnand %p419_p4, %p538_p5 }
 0x1f6   : > { %p425_p11 = por %p424_p10, %p423_p9 }
 0x1f7   : > { %p421_p8 = pneg %p420_p7 }
 0x1f8   : > { %p427_p13 = por %p426_p12, %p425_p11 }
 0x1fa   : > { %p428_p0 = pnand %p427_p13, %p421_p8 }
 0x1fc   : > { %431 = shalt.err (!%p428_p0)
}
 0x1fd   : > { %358 = dma.vmem_to_hbm [thread:$0]  (%p538_p5), %s574_s6, 256, %s572_s9, %s270_s10  }
 0x1fe PF: > { %p364_p1 = scmp.ge.s32.totalorder %s466_s21, 2  ;;  %s296_s26 = sand.u32 1, %s454_s18  }
 0x1ff   : > { %s297_s30 = scalar_lea.sflag [#allocation3], %s296_s26 }
 0x200   : > { %p361_p2 = pnand %p364_p1, %p542_p6 }
 0x202   : > { %449 = dma.done.wait (!%p361_p2), %s297_s30, 256  }
 0x203   : > { %451 = vsyncadd (!%p361_p2), %s297_s30, 4294967040  ;;  %p15_p3 = scmp.ge.s32.totalorder %s525_s24, 4   ;;  %s622_s18 = smov %s458_s19 }
 0x204   : > { %s623_s19 = smov %s462_s20  ;;  %s624_s20 = smov %s536_s27 }
 0x205   : > { %s625_s21 = smov %s525_s24  ;;  %17 = sbr.rel (!%p15_p3) target bundleno = 3 (0x3), region = 75 }
 0x20c   :  { %302 = vsyncpa [#allocation3], 1 }
 0x20d   :  { %304 = vsyncpa [#allocation3 + $0x1], 1 }

</bundles_post_ra>
